<compile_context>
chip_gen: v7x
topology: tpu7x:2x2x1
jax: 0.10.0
libtpu: 0.0.40
codegen_flags: <defaults>
</compile_context>

<pallas_src>
import functools
import math

import jax
import jax.numpy as jnp
from jax.experimental import pallas as pl
from jax.experimental.pallas import tpu as pltpu


# ---------------------------------------------------------------------------
# Parameters (defaults of DiehlLIFParameters, baked in as Python floats).
# ---------------------------------------------------------------------------
class DiehlLIFParams:
    tau_syn_exc_inv = 1.0 / 5.0
    tau_syn_inh_inv = 1.0 / 5.0
    tau_v_thresh_inv = 1.0 / 10000.0
    c_m_inv = 1.0 / 0.2
    g_l = (1.0 / 20.0) * (1.0 / 0.2)
    e_rev_I = -100.0
    e_rev_E = 60.0
    v_rest = -20.0
    v_reset = -70.0
    v_thresh = -10.0
    v_thresh_plus = 0.05
    v_thresh_max = 35.0
    alpha = 100.0  # only affects the backward of the 'super' surrogate; forward = heaviside


# ---------------------------------------------------------------------------
# Shared elementwise math (mirrors diehl_lif_feed_forward_step).
# ---------------------------------------------------------------------------
def _diehl_step_math(x, v, g_e, g_i, dvt, *, dt, p):
    relu_x = jnp.maximum(x, 0.0)
    g_e = g_e + relu_x
    g_i = g_i + (relu_x - x)                  # == relu(-x) exactly, reuses the max

    # exponential decay of conductances
    g_e = g_e + (-dt * p.tau_syn_exc_inv) * g_e
    g_i = g_i + (-dt * p.tau_syn_inh_inv) * g_i

    # conductance-based membrane update
    dv = (dt * p.c_m_inv) * (
        p.g_l * (p.v_rest - v)
        + g_e * (p.e_rev_E - v)
        + g_i * (p.e_rev_I - v)
    )
    v = v + dv

    # adaptive threshold + spike (forward of 'super' surrogate = heaviside)
    v_thresh = p.v_thresh + dvt
    z = (v - v_thresh > 0).astype(v.dtype)

    # reset (exactly equivalent to (1-z)*v + z*v_reset for z in {0,1})
    v = jnp.where(z > 0, p.v_reset, v)

    # threshold adaptation
    dvt = (1.0 - dt * p.tau_v_thresh_inv) * dvt + p.v_thresh_plus * z
    dvt = jnp.clip(dvt, 0.0, p.v_thresh_max)
    return z, v, g_e, g_i, dvt


# ---------------------------------------------------------------------------
# Kernels
# ---------------------------------------------------------------------------
def _diehl_lif_step_kernel(x_ref, v_ref, ge_ref, gi_ref, dvt_ref,
                           z_out, v_out, ge_out, gi_out, dvt_out, *, dt, p):
    z, v, g_e, g_i, dvt = _diehl_step_math(
        x_ref[...], v_ref[...], ge_ref[...], gi_ref[...], dvt_ref[...],
        dt=dt, p=p)
    z_out[...] = z
    v_out[...] = v
    ge_out[...] = g_e
    gi_out[...] = g_i
    dvt_out[...] = dvt


def _diehl_lif_init_kernel(x_ref, z_out, v_out, ge_out, gi_out, dvt_out, *, dt, p):
    # state=None path: zero state synthesized in-register (no HBM reads of zeros).
    x = x_ref[...]
    zero = jnp.zeros_like(x)
    z, v, g_e, g_i, dvt = _diehl_step_math(x, zero, zero, zero, zero, dt=dt, p=p)
    z_out[...] = z
    v_out[...] = v
    ge_out[...] = g_e
    gi_out[...] = g_i
    dvt_out[...] = dvt


# ---------------------------------------------------------------------------
# Wrapper: DiehlLIFCell.forward
# ---------------------------------------------------------------------------
_VMEM_BLOCK_BUDGET = 24 * 1024 * 1024   # bytes for all double-buffered stream blocks
_VMEM_LIMIT_BYTES = 32 * 1024 * 1024    # scoped-VMEM request (safe on v5e/v6e/v7x)


def _choose_width(n):
    for w in (1024, 512, 256, 128):
        if n % w == 0:
            return w, False
    return 128, True


def _block_rows(rows, width, n_streams, itemsize):
    """Largest multiple-of-8 row tile so n_streams x 2 buffers fit the budget."""
    per_buf_bytes = _VMEM_BLOCK_BUDGET // (n_streams * 2)
    cand = max(8, (per_buf_bytes // (width * itemsize)) // 8 * 8)
    return rows if rows <= cand else cand   # full extent (any size) or multiple of 8


def diehl_lif_cell(input_tensor, state=None, dt=0.001, p=DiehlLIFParams):
    """Returns (z, (v, g_e, g_i, delta_v_thresh)), matching DiehlLIFCell.forward."""
    orig_shape = input_tensor.shape
    dtype = input_tensor.dtype
    n = int(math.prod(orig_shape))

    width, needs_pad = _choose_width(n)
    rows = -(-n // width)
    n_slab = rows * width
    itemsize = jnp.dtype(dtype).itemsize

    def to_slab(a):
        flat = a.reshape(-1)
        if needs_pad:
            flat = jnp.pad(flat, (0, n_slab - n))
        return flat.reshape(rows, width)

    def from_slab(a):
        if needs_pad:
            return a.reshape(-1)[:n].reshape(orig_shape)
        return a.reshape(orig_shape)

    n_streams = 6 if state is None else 10
    blk_r = _block_rows(rows, width, n_streams, itemsize)
    grid = (pl.cdiv(rows, blk_r),)

    block = pl.BlockSpec((blk_r, width), lambda i: (i, 0))
    out_sds = jax.ShapeDtypeStruct((rows, width), dtype)

    compiler_params = pltpu.CompilerParams(
        dimension_semantics=("parallel",),
        vmem_limit_bytes=_VMEM_LIMIT_BYTES)

    x2 = to_slab(input_tensor)

    if state is None:
        kernel = functools.partial(_diehl_lif_init_kernel, dt=float(dt), p=p)
        cost = pl.CostEstimate(flops=20 * n_slab, transcendentals=0,
                               bytes_accessed=n_streams * n_slab * itemsize)
        z2, v2n, ge2n, gi2n, dvt2n = pl.pallas_call(
            kernel,
            out_shape=(out_sds,) * 5,
            grid=grid,
            in_specs=[block],
            out_specs=(block,) * 5,
            compiler_params=compiler_params,
            cost_estimate=cost,
        )(x2)
    else:
        v0, ge0, gi0, dvt0 = state
        kernel = functools.partial(_diehl_lif_step_kernel, dt=float(dt), p=p)
        cost = pl.CostEstimate(flops=20 * n_slab, transcendentals=0,
                               bytes_accessed=n_streams * n_slab * itemsize)
        z2, v2n, ge2n, gi2n, dvt2n = pl.pallas_call(
            kernel,
            out_shape=(out_sds,) * 5,
            grid=grid,
            in_specs=[block] * 5,
            out_specs=(block,) * 5,
            # State is semantically updated in place: reuse its HBM buffers.
            input_output_aliases={1: 1, 2: 2, 3: 3, 4: 4},
            compiler_params=compiler_params,
            cost_estimate=cost,
        )(x2, to_slab(v0), to_slab(ge0), to_slab(gi0), to_slab(dvt0))

    z = from_slab(z2)
    new_state = (from_slab(v2n), from_slab(ge2n), from_slab(gi2n), from_slab(dvt2n))
    return z, new_state


# ---------------------------------------------------------------------------
# Pure-JAX reference (mirrors the PyTorch code) for verification.
# ---------------------------------------------------------------------------
def _reference(x, state, dt=0.001, p=DiehlLIFParams):
    v0, ge0, gi0, dvt0 = state
    g_e = ge0 + jax.nn.relu(x)
    g_i = gi0 + jax.nn.relu(-x)
    g_e = g_e + (-dt * p.tau_syn_exc_inv) * g_e
    g_i = g_i + (-dt * p.tau_syn_inh_inv) * g_i
    dv = dt * p.c_m_inv * (p.g_l * (p.v_rest - v0)
                           + g_e * (p.e_rev_E - v0)
                           + g_i * (p.e_rev_I - v0))
    v = v0 + dv
    v_thresh = p.v_thresh + dvt0
    z = (v - v_thresh > 0).astype(v.dtype)
    v = (1 - z) * v + z * p.v_reset
    dvt = (1 - dt * p.tau_v_thresh_inv) * dvt0 + p.v_thresh_plus * z
    dvt = jnp.clip(dvt, 0.0, p.v_thresh_max)
    return z, (v, g_e, g_i, dvt)


def _check_close(actual_list, expected_list, tol):
    for a, b in zip(actual_list, expected_list):
        assert a.shape == b.shape and a.dtype == b.dtype
        assert float(jnp.max(jnp.abs(a - b))) < tol


if __name__ == "__main__":
    key = jax.random.PRNGKey(0)

    # --- Small NCHW input (module accepts arbitrary shapes) -----------------
    x = jax.random.normal(key, (2, 4, 16, 16), dtype=jnp.float32) * 5.0

    # Step 1: state=None path (zero state synthesized in-register).
    z, (v, g_e, g_i, dvt) = diehl_lif_cell(x, state=None, dt=0.001)
    jax.block_until_ready((z, v, g_e, g_i, dvt))

    zeros = jnp.zeros_like(x)
    z_ref, (v_ref, ge_ref, gi_ref, dvt_ref) = _reference(
        x, (zeros, zeros, zeros, zeros))
    _check_close([z, v, g_e, g_i, dvt],
                 [z_ref, v_ref, ge_ref, gi_ref, dvt_ref], 1e-5)

    # Step 2: recurrent usage (aliased-state kernel path).  The reference is
    # computed *before* the kernel call so the comparison never reads a state
    # buffer that the aliased call may have consumed.
    z2_ref, st2_ref = _reference(x, (v, g_e, g_i, dvt))
    jax.block_until_ready((z2_ref,) + tuple(st2_ref))
    z2, state2 = diehl_lif_cell(x, state=(v, g_e, g_i, dvt), dt=0.001)
    jax.block_until_ready((z2,) + tuple(state2))
    _check_close((z2,) + tuple(state2), (z2_ref,) + tuple(st2_ref), 1e-4)

    # --- Ragged element count: exercises the padded-tail path ---------------
    key, k2 = jax.random.split(key)
    x_r = jax.random.normal(k2, (2, 3, 5, 7), dtype=jnp.float32) * 5.0
    z_r, st_r = diehl_lif_cell(x_r, state=None, dt=0.001)
    jax.block_until_ready((z_r,) + tuple(st_r))
    zr_ref, str_ref = _reference(x_r, (jnp.zeros_like(x_r),) * 4)
    _check_close((z_r,) + tuple(st_r), (zr_ref,) + tuple(str_ref), 1e-5)

    # --- Larger input: exercises the multi-block pipelined grid path --------
    key, k3 = jax.random.split(key)
    x_big = jax.random.normal(k3, (8, 16, 64, 64), dtype=jnp.float32) * 5.0
    z_b, st_b = diehl_lif_cell(x_big, state=None, dt=0.001)
    z_b2, st_b2 = diehl_lif_cell(x_big, state=st_b, dt=0.001)
    jax.block_until_ready((z_b2,) + tuple(st_b2))
    # Sanity only (no strict elementwise compare at this size to avoid
    # threshold-flip sensitivity to 1-ulp compiler differences).
    assert bool(jnp.all(jnp.isfinite(st_b2[0])))
    assert bool(jnp.all((z_b2 == 0) | (z_b2 == 1)))

    # TODO(synk): backward pass of the 'super' surrogate (alpha=100) is not
    # implemented; only the forward heaviside semantics are provided.
    print("KERNEL_OK")
</pallas_src>

<mosaic_0001>
module attributes {stable_mosaic.version = 11 : i64} {
  func.func @_diehl_lif_init_kernel(%arg0: i32, %arg1: memref<2x1024xf32, #tpu.memory_space<vmem>>, %arg2: memref<2x1024xf32, #tpu.memory_space<vmem>>, %arg3: memref<2x1024xf32, #tpu.memory_space<vmem>>, %arg4: memref<2x1024xf32, #tpu.memory_space<vmem>>, %arg5: memref<2x1024xf32, #tpu.memory_space<vmem>>, %arg6: memref<2x1024xf32, #tpu.memory_space<vmem>>) attributes {dimension_semantics = [#tpu.dimension_semantics<parallel>], iteration_bounds = array<i64: 1>, scalar_prefetch = 0 : i64, scratch_operands = 0 : i64, tpu.core_type = #tpu.core_type<tc>, window_params = [{transform_indices = @transform_0, window_bounds = array<i64: 2, 1024>}, {transform_indices = @transform_1, window_bounds = array<i64: 2, 1024>}, {transform_indices = @transform_2, window_bounds = array<i64: 2, 1024>}, {transform_indices = @transform_3, window_bounds = array<i64: 2, 1024>}, {transform_indices = @transform_4, window_bounds = array<i64: 2, 1024>}, {transform_indices = @transform_5, window_bounds = array<i64: 2, 1024>}]} {
    %c0 = arith.constant 0 : index
    %c0_0 = arith.constant 0 : index
    %0 = vector.load %arg1[%c0, %c0_0] : memref<2x1024xf32, #tpu.memory_space<vmem>>, vector<2x1024xf32>
    %cst = arith.constant 0.000000e+00 : f32
    %1 = vector.broadcast %cst : f32 to vector<2x1024xf32>
    %cst_1 = arith.constant 0.000000e+00 : f32
    %2 = vector.broadcast %cst_1 : f32 to vector<2x1024xf32>
    %3 = arith.maximumf %0, %2 : vector<2x1024xf32>
    %4 = arith.addf %1, %3 : vector<2x1024xf32>
    %5 = arith.subf %3, %0 : vector<2x1024xf32>
    %6 = arith.addf %1, %5 : vector<2x1024xf32>
    %cst_2 = arith.constant -2.000000e-04 : f32
    %7 = vector.broadcast %cst_2 : f32 to vector<2x1024xf32>
    %8 = arith.mulf %7, %4 : vector<2x1024xf32>
    %9 = arith.addf %4, %8 : vector<2x1024xf32>
    %cst_3 = arith.constant -2.000000e-04 : f32
    %10 = vector.broadcast %cst_3 : f32 to vector<2x1024xf32>
    %11 = arith.mulf %10, %6 : vector<2x1024xf32>
    %12 = arith.addf %6, %11 : vector<2x1024xf32>
    %cst_4 = arith.constant -2.000000e+01 : f32
    %13 = vector.broadcast %cst_4 : f32 to vector<2x1024xf32>
    %14 = arith.subf %13, %1 : vector<2x1024xf32>
    %cst_5 = arith.constant 2.500000e-01 : f32
    %15 = vector.broadcast %cst_5 : f32 to vector<2x1024xf32>
    %16 = arith.mulf %15, %14 : vector<2x1024xf32>
    %cst_6 = arith.constant 6.000000e+01 : f32
    %17 = vector.broadcast %cst_6 : f32 to vector<2x1024xf32>
    %18 = arith.subf %17, %1 : vector<2x1024xf32>
    %19 = arith.mulf %9, %18 : vector<2x1024xf32>
    %20 = arith.addf %16, %19 : vector<2x1024xf32>
    %cst_7 = arith.constant -1.000000e+02 : f32
    %21 = vector.broadcast %cst_7 : f32 to vector<2x1024xf32>
    %22 = arith.subf %21, %1 : vector<2x1024xf32>
    %23 = arith.mulf %12, %22 : vector<2x1024xf32>
    %24 = arith.addf %20, %23 : vector<2x1024xf32>
    %cst_8 = arith.constant 5.000000e-03 : f32
    %25 = vector.broadcast %cst_8 : f32 to vector<2x1024xf32>
    %26 = arith.mulf %25, %24 : vector<2x1024xf32>
    %27 = arith.addf %1, %26 : vector<2x1024xf32>
    %cst_9 = arith.constant -1.000000e+01 : f32
    %28 = vector.broadcast %cst_9 : f32 to vector<2x1024xf32>
    %29 = arith.addf %28, %1 : vector<2x1024xf32>
    %30 = arith.subf %27, %29 : vector<2x1024xf32>
    %cst_10 = arith.constant 0.000000e+00 : f32
    %31 = vector.broadcast %cst_10 : f32 to vector<2x1024xf32>
    %32 = arith.cmpf ogt, %30, %31 : vector<2x1024xf32>
    %33 = arith.extui %32 : vector<2x1024xi1> to vector<2x1024xi32>
    %34 = arith.sitofp %33 : vector<2x1024xi32> to vector<2x1024xf32>
    %cst_11 = arith.constant 0.000000e+00 : f32
    %35 = vector.broadcast %cst_11 : f32 to vector<2x1024xf32>
    %36 = arith.cmpf ogt, %34, %35 : vector<2x1024xf32>
    %cst_12 = arith.constant -7.000000e+01 : f32
    %37 = vector.broadcast %cst_12 : f32 to vector<2x1024xf32>
    %38 = arith.select %36, %37, %27 : vector<2x1024xi1>, vector<2x1024xf32>
    %cst_13 = arith.constant 0.99999988 : f32
    %39 = vector.broadcast %cst_13 : f32 to vector<2x1024xf32>
    %40 = arith.mulf %39, %1 : vector<2x1024xf32>
    %cst_14 = arith.constant 5.000000e-02 : f32
    %41 = vector.broadcast %cst_14 : f32 to vector<2x1024xf32>
    %42 = arith.mulf %41, %34 : vector<2x1024xf32>
    %43 = arith.addf %40, %42 : vector<2x1024xf32>
    %cst_15 = arith.constant 0.000000e+00 : f32
    %cst_16 = arith.constant 3.500000e+01 : f32
    %44 = vector.broadcast %cst_15 : f32 to vector<2x1024xf32>
    %45 = arith.maximumf %44, %43 : vector<2x1024xf32>
    %46 = vector.broadcast %cst_16 : f32 to vector<2x1024xf32>
    %47 = arith.minimumf %46, %45 : vector<2x1024xf32>
    %c0_17 = arith.constant 0 : index
    %c0_18 = arith.constant 0 : index
    %48 = vector.load %arg2[%c0_17, %c0_18] : memref<2x1024xf32, #tpu.memory_space<vmem>>, vector<2x1024xf32>
    tpu.vector_store %arg2[%c0_17, %c0_18], %34 {strides = array<i32>} : memref<2x1024xf32, #tpu.memory_space<vmem>>, vector<2x1024xf32>,
    %c0_19 = arith.constant 0 : index
    %c0_20 = arith.constant 0 : index
    %49 = vector.load %arg3[%c0_19, %c0_20] : memref<2x1024xf32, #tpu.memory_space<vmem>>, vector<2x1024xf32>
    tpu.vector_store %arg3[%c0_19, %c0_20], %38 {strides = array<i32>} : memref<2x1024xf32, #tpu.memory_space<vmem>>, vector<2x1024xf32>,
    %c0_21 = arith.constant 0 : index
    %c0_22 = arith.constant 0 : index
    %50 = vector.load %arg4[%c0_21, %c0_22] : memref<2x1024xf32, #tpu.memory_space<vmem>>, vector<2x1024xf32>
    tpu.vector_store %arg4[%c0_21, %c0_22], %9 {strides = array<i32>} : memref<2x1024xf32, #tpu.memory_space<vmem>>, vector<2x1024xf32>,
    %c0_23 = arith.constant 0 : index
    %c0_24 = arith.constant 0 : index
    %51 = vector.load %arg5[%c0_23, %c0_24] : memref<2x1024xf32, #tpu.memory_space<vmem>>, vector<2x1024xf32>
    tpu.vector_store %arg5[%c0_23, %c0_24], %12 {strides = array<i32>} : memref<2x1024xf32, #tpu.memory_space<vmem>>, vector<2x1024xf32>,
    %c0_25 = arith.constant 0 : index
    %c0_26 = arith.constant 0 : index
    %52 = vector.load %arg6[%c0_25, %c0_26] : memref<2x1024xf32, #tpu.memory_space<vmem>>, vector<2x1024xf32>
    tpu.vector_store %arg6[%c0_25, %c0_26], %47 {strides = array<i32>} : memref<2x1024xf32, #tpu.memory_space<vmem>>, vector<2x1024xf32>,
    return
  }
  func.func @transform_0(%arg0: i32) -> (i32, i32) {
    %c0_i32 = arith.constant 0 : i32
    %c0_i32_0 = arith.constant 0 : i32
    return %arg0, %c0_i32 : i32, i32
  }
  func.func @transform_1(%arg0: i32) -> (i32, i32) {
    %c0_i32 = arith.constant 0 : i32
    %c0_i32_0 = arith.constant 0 : i32
    return %arg0, %c0_i32 : i32, i32
  }
  func.func @transform_2(%arg0: i32) -> (i32, i32) {
    %c0_i32 = arith.constant 0 : i32
    %c0_i32_0 = arith.constant 0 : i32
    return %arg0, %c0_i32 : i32, i32
  }
  func.func @transform_3(%arg0: i32) -> (i32, i32) {
    %c0_i32 = arith.constant 0 : i32
    %c0_i32_0 = arith.constant 0 : i32
    return %arg0, %c0_i32 : i32, i32
  }
  func.func @transform_4(%arg0: i32) -> (i32, i32) {
    %c0_i32 = arith.constant 0 : i32
    %c0_i32_0 = arith.constant 0 : i32
    return %arg0, %c0_i32 : i32, i32
  }
  func.func @transform_5(%arg0: i32) -> (i32, i32) {
    %c0_i32 = arith.constant 0 : i32
    %c0_i32_0 = arith.constant 0 : i32
    return %arg0, %c0_i32 : i32, i32
  }
}

</mosaic_0001>

<bundles_post_ra>
// kernel: tpu_custom_call.1
= control target key start
LH: loop header
LB: loop body
LE: loop exit
PB: predicated region body
PF: predicated region fallthrough
CT: control target
= control target key end

     0   :  { %11 = vsyncpa [#allocation3], 0  ;;  %s438_s0 = inlined_call_operand.hbm [shape: f32[2,1024], index: 0, kind: input, shape index: {}]   ;;  %s439_s1 = inlined_call_operand.hbm [shape: f32[2,1024], index: 1, kind: output, shape index: {0}]   ;;  %s440_s2 = inlined_call_operand.hbm [shape: f32[2,1024], index: 2, kind: output, shape index: {1}]   ;;  %s441_s3 = inlined_call_operand.hbm [shape: f32[2,1024], index: 3, kind: output, shape index: {2}]   ;;  %s442_s4 = inlined_call_operand.hbm [shape: f32[2,1024], index: 4, kind: output, shape index: {3}]   ;;  %s443_s5 = inlined_call_operand.hbm [shape: f32[2,1024], index: 5, kind: output, shape index: {4}]  }
   0x1   :  { %12 = vsyncpa [#allocation4], 0 }
   0x2   :  { %13 = vsyncpa [#allocation7], 0 }
   0x3   :  { %14 = vsyncpa [#allocation10], 0  ;;  %s308_s18 = smov [#allocation2]   ;;  %s168_s22 = scalar_lea.hbm %s438_s0, 256 }
   0x4   :  { %s21_s19 = sshll.u32 %s308_s18, 4  ;;  %p169_p0 = scmp.ne.s32.totalorder %s438_s0, %s168_s22  ;;  %s22_s19 = int_to_ptr.vmem [resolvable:$true] %s21_s19 }
   0x5   :  { %p172_p1 = scmp.lt.u32.totalorder %s168_s22, %s438_s0 }
   0x7   :  { %p174_p2 = pnand %p172_p1, %p169_p0 }
   0x9   :  { %177 = shalt.err (!%p174_p2)
}
   0xa   :  { %s178_s27 = scalar_lea.vmem %s22_s19, 256  ;;  %p183_p4 = scmp.lt.s32.totalorder %s22_s19, %s22_s19 }
   0xb   :  { %p179_p3 = scmp.ne.s32.totalorder %s22_s19, %s178_s27  ;;  %p184_p5 = scmp.lt.s32.totalorder %s178_s27, %s178_s27 }
   0xd   :  { %p185_p6 = por %p184_p5, %p183_p4 }
   0xf   :  { %p186_p7 = pnand %p185_p6, %p179_p3 }
  0x11   :  { %189 = shalt.err (!%p186_p7)
}
  0x12   :  { %24 = dma.hbm_to_vmem [thread:$0]  %s438_s0, 256, %s22_s19, [#allocation3]  }
  0x13   :  { %300 = dma.done.wait [#allocation3], 256  }
  0x14   :  { %301 = vsyncadd [#allocation3], 4294967040  ;;  %v28_v0 = vld [vmem:[#allocation2] sm:$0xff]  ;;  %v29_v1 = vld [vmem:[#allocation2 + $0x8] sm:$0xff]  ;;  %s309_s30 = smov [#allocation9]  }
  0x15   :  { %v30_v2 = vmax.f32 %v28_v0, 0.0  ;;  %v31_v3 = vmax.f32 %v29_v1, 0.0  ;;  %s124_s6 = sshll.u32 %s309_s30, 4  ;;  %s125_s6 = int_to_ptr.vmem [resolvable:$true] %s124_s6 }
  0x16   :  { %s190_s0 = scalar_lea.vmem %s125_s6, 256  ;;  %p195_p9 = scmp.lt.s32.totalorder %s125_s6, %s125_s6 }
  0x17   :  { %v34_v4 = vsub.f32 %v30_v2, %v28_v0  ;;  %v38_v5 = vmul.f32 -0.0002, %v30_v2  ;;  %v35_v6 = vsub.f32 %v31_v3, %v29_v1  ;;  %v39_v7 = vmul.f32 -0.0002, %v31_v3  ;;  %p191_p8 = scmp.ne.s32.totalorder %s125_s6, %s190_s0  ;;  %p196_p10 = scmp.lt.s32.totalorder %s190_s0, %s190_s0 }
  0x19   :  { %v40_v8 = vadd.f32 %v38_v5, %v30_v2  ;;  %v42_v9 = vmul.f32 -0.0002, %v34_v4  ;;  %v41_v10 = vadd.f32 %v39_v7, %v31_v3  ;;  %v43_v11 = vmul.f32 -0.0002, %v35_v6  ;;  %p197_p11 = por %p196_p10, %p195_p9 }
  0x1b   :  { %v44_v12 = vadd.f32 %v42_v9, %v34_v4  ;;  %v46_v13 = vmul.f32 60.0, %v40_v8  ;;  %82 = vst [vmem:[#allocation8] sm:$0xff] %v40_v8  ;;  %v45_v14 = vadd.f32 %v43_v11, %v35_v6  ;;  %v47_v15 = vmul.f32 60.0, %v41_v10  ;;  %83 = vst [vmem:[#allocation8 + $0x8] sm:$0xff] %v41_v10  ;;  %p198_p12 = pnand %p197_p11, %p191_p8 }
  0x1d   :  { %v48_v16 = vadd.f32 -5.0, %v46_v13  ;;  %v50_v17 = vmul.f32 -100.0, %v44_v12  ;;  %84 = vst [vmem:[#allocation9] sm:$0xff] %v44_v12  ;;  %v49_v18 = vadd.f32 -5.0, %v47_v15  ;;  %v51_v19 = vmul.f32 -100.0, %v45_v14  ;;  %85 = vst [vmem:[#allocation9 + $0x8] sm:$0xff] %v45_v14 }
  0x1e   :  { %201 = shalt.err (!%p198_p12)
}
  0x1f   :  { %s202_s9 = scalar_lea.hbm %s442_s4, 256 }
  0x20   :  { %p203_p13 = scmp.ne.s32.totalorder %s442_s4, %s202_s9  ;;  %p206_p0 = scmp.lt.u32.totalorder %s202_s9, %s442_s4 }
  0x22   :  { %p208_p1 = pnand %p206_p0, %p203_p13 }
  0x24   :  { %211 = shalt.err (!%p208_p1)
}
  0x25   :  { %127 = dma.vmem_to_hbm [thread:$0]  %s125_s6, 256, %s442_s4, [#allocation10]   ;;  %v52_v20 = vadd.f32 %v50_v17, %v48_v16  ;;  %v53_v21 = vadd.f32 %v51_v19, %v49_v18  ;;  %v313_v26 = vmov 0.0  }
  0x26   :  { %s310_s16 = smov [#allocation5]   ;;  %s311_s18 = smov [#allocation6]  }
  0x27   :  { %v54_v22 = vmul.f32 0.005, %v52_v20  ;;  %v55_v23 = vmul.f32 0.005, %v53_v21  ;;  %s94_s17 = sshll.u32 %s310_s16, 4  ;;  %s104_s19 = sshll.u32 %s311_s18, 4  ;;  %s95_s17 = int_to_ptr.vmem [resolvable:$true] %s94_s17  ;;  %s369_s19 = int_to_ptr.vmem [resolvable:$true] %s104_s19 }
  0x28   :  { %s312_s20 = smov [#allocation8]   ;;  %s314_s22 = smov [#allocation11]  }
  0x29   :  { %v157_v24 = vadd.f32 10.0, %v54_v22  ;;  %v158_v25 = vadd.f32 10.0, %v55_v23  ;;  %s114_s21 = sshll.u32 %s312_s20, 4  ;;  %s134_s4 = sshll.u32 %s314_s22, 4  ;;  %s371_s21 = int_to_ptr.vmem [resolvable:$true] %s114_s21  ;;  %s385_s4 = int_to_ptr.vmem [resolvable:$true] %s134_s4 }
  0x2a   :  { %s212_s23 = scalar_lea.vmem %s95_s17, 256  ;;  %p217_p3 = scmp.lt.s32.totalorder %s95_s17, %s95_s17 }
  0x2b   :  { %vm60_vm0 = vcmp.gt.f32.partialorder %v157_v24, 0.0  ;;  %vm61_vm1 = vcmp.gt.f32.partialorder %v158_v25, 0.0  ;;  %p213_p2 = scmp.ne.s32.totalorder %s95_s17, %s212_s23  ;;  %p218_p4 = scmp.lt.s32.totalorder %s212_s23, %s212_s23 }
  0x2c   :  { %v159_v27 = vsel %vm60_vm0, 1.0, %v313_v26  ;;  %v160_v28 = vsel %vm61_vm1, 1.0, %v313_v26 }
  0x2d   :  { %vm66_vm2 = vcmp.gt.f32.partialorder %v159_v27, 0.0  ;;  %78 = vst [vmem:[#allocation5] sm:$0xff] %v159_v27  ;;  %vm67_vm3 = vcmp.gt.f32.partialorder %v160_v28, 0.0  ;;  %79 = vst [vmem:[#allocation5 + $0x8] sm:$0xff] %v160_v28  ;;  %v70_v29 = vmul.f32 0.05, %v159_v27  ;;  %p219_p5 = por %p218_p4, %p217_p3 }
  0x2e   :  { %v71_v30 = vmul.f32 0.05, %v160_v28  ;;  %v68_v31 = vsel %vm66_vm2, -70.0, %v54_v22  ;;  %v69_v32 = vsel %vm67_vm3, -70.0, %v55_v23 }
  0x2f   :  { %p220_p6 = pnand %p219_p5, %p213_p2 }
  0x31   :  { %223 = shalt.err (!%p220_p6)
}
  0x32   :  { %s224_s26 = scalar_lea.hbm %s439_s1, 256 }
  0x33   :  { %p225_p7 = scmp.ne.s32.totalorder %s439_s1, %s224_s26  ;;  %p228_p8 = scmp.lt.u32.totalorder %s224_s26, %s439_s1 }
  0x35   :  { %p230_p9 = pnand %p228_p8, %p225_p7 }
  0x37   :  { %233 = shalt.err (!%p230_p9)
}
  0x38   :  { %97 = dma.vmem_to_hbm [thread:$0]  %s95_s17, 256, %s439_s1, [#allocation4]   ;;  %80 = vst [vmem:[#allocation6] sm:$0xff] %v68_v31  ;;  %81 = vst [vmem:[#allocation6 + $0x8] sm:$0xff] %v69_v32  ;;  %v74_v33 = vmax.f32 %v70_v29, 0.0  ;;  %v75_v34 = vmax.f32 %v71_v30, 0.0 }
  0x39   :  { %s234_s7 = scalar_lea.vmem %s369_s19, 256  ;;  %p239_p11 = scmp.lt.s32.totalorder %s369_s19, %s369_s19 }
  0x3a   :  { %p235_p10 = scmp.ne.s32.totalorder %s369_s19, %s234_s7  ;;  %p240_p12 = scmp.lt.s32.totalorder %s234_s7, %s234_s7 }
  0x3c   :  { %p241_p13 = por %p240_p12, %p239_p11 }
  0x3e   :  { %p242_p0 = pnand %p241_p13, %p235_p10 }
  0x40   :  { %245 = shalt.err (!%p242_p0)
}
  0x41   :  { %s246_s10 = scalar_lea.hbm %s440_s2, 256 }
  0x42   :  { %p247_p1 = scmp.ne.s32.totalorder %s440_s2, %s246_s10  ;;  %p250_p2 = scmp.lt.u32.totalorder %s246_s10, %s440_s2 }
  0x44   :  { %p252_p3 = pnand %p250_p2, %p247_p1 }
  0x46   :  { %255 = shalt.err (!%p252_p3)
}
  0x47   :  { %107 = dma.vmem_to_hbm [thread:$0]  %s369_s19, 256, %s440_s2, [#allocation7]   ;;  %v76_v35 = vmin.f32 %v74_v33, 35.0  ;;  %v77_v36 = vmin.f32 %v75_v34, 35.0 }
  0x48   :  { %s256_s16 = scalar_lea.vmem %s371_s21, 256  ;;  %p261_p5 = scmp.lt.s32.totalorder %s371_s21, %s371_s21 }
  0x49   :  { %p257_p4 = scmp.ne.s32.totalorder %s371_s21, %s256_s16  ;;  %p262_p6 = scmp.lt.s32.totalorder %s256_s16, %s256_s16 }
  0x4b   :  { %p263_p7 = por %p262_p6, %p261_p5 }
  0x4d   :  { %p264_p8 = pnand %p263_p7, %p257_p4 }
  0x4f   :  { %267 = shalt.err (!%p264_p8)
}
  0x50   :  { %s268_s20 = scalar_lea.hbm %s441_s3, 256 }
  0x51   :  { %p269_p9 = scmp.ne.s32.totalorder %s441_s3, %s268_s20  ;;  %p272_p10 = scmp.lt.u32.totalorder %s268_s20, %s441_s3 }
  0x53   :  { %p274_p11 = pnand %p272_p10, %p269_p9 }
  0x55   :  { %277 = shalt.err (!%p274_p11)
}
  0x56   :  { %117 = dma.vmem_to_hbm [thread:$0]  %s371_s21, 256, %s441_s3, [#allocation7]   ;;  %86 = vst [vmem:[#allocation11] sm:$0xff] %v76_v35  ;;  %87 = vst [vmem:[#allocation11 + $0x8] sm:$0xff] %v77_v36 }
  0x57   :  { %s278_s26 = scalar_lea.vmem %s385_s4, 256  ;;  %p283_p13 = scmp.lt.s32.totalorder %s385_s4, %s385_s4 }
  0x58   :  { %p279_p12 = scmp.ne.s32.totalorder %s385_s4, %s278_s26  ;;  %p284_p0 = scmp.lt.s32.totalorder %s278_s26, %s278_s26 }
  0x5a   :  { %p285_p1 = por %p284_p0, %p283_p13 }
  0x5c   :  { %p286_p2 = pnand %p285_p1, %p279_p12 }
  0x5e   :  { %289 = shalt.err (!%p286_p2)
}
  0x5f   :  { %s290_s29 = scalar_lea.hbm %s443_s5, 256 }
  0x60   :  { %p291_p3 = scmp.ne.s32.totalorder %s443_s5, %s290_s29  ;;  %p294_p4 = scmp.lt.u32.totalorder %s290_s29, %s443_s5 }
  0x62   :  { %p296_p5 = pnand %p294_p4, %p291_p3 }
  0x64   :  { %299 = shalt.err (!%p296_p5)
}
  0x65   :  { %137 = dma.vmem_to_hbm [thread:$0]  %s385_s4, 256, %s443_s5, [#allocation10]  }
  0x66   :  { %302 = dma.done.wait [#allocation4], 256  }
  0x67   :  { %303 = vsyncadd [#allocation4], 4294967040 }
  0x68   :  { %304 = dma.done.wait [#allocation7], 512  }
  0x69   :  { %305 = vsyncadd [#allocation7], 4294966784 }
  0x6a   :  { %306 = dma.done.wait [#allocation10], 512  }
  0x6b   :  { %307 = vsyncadd [#allocation10], 4294966784 }
  0x6c   :  { %153 = vsyncpa [#allocation3], 1 }
  0x6d   :  { %154 = vsyncpa [#allocation4], 1 }
  0x6e   :  { %155 = vsyncpa [#allocation7], 1 }
  0x6f   :  { %156 = vsyncpa [#allocation10], 1 }

</bundles_post_ra>
